<compile_context>
chip_gen: v5e
topology: v5e:2x2
jax: 0.10.0
libtpu: 0.0.40
codegen_flags: <defaults>
</compile_context>

<pallas_src>
import numpy as np
import jax
import jax.numpy as jnp
from jax.experimental import pallas as pl
from jax.experimental.pallas import tpu as pltpu

LANE = 128
Q_ROWS = 8  # output rows: q1 in row 0, q2 in row 1, rows 2..7 are zero padding


def _round_up(x, m):
    return ((x + m - 1) // m) * m


def critic_kernel(sa_ref, w1_ref, b1_ref, w2_ref, b2_ref, w3_ref, b3_ref, q_ref):
    # Feature-major layout: columns = batch (lanes), rows = features (sublanes).
    sa = sa_ref[...]                                                  # [sa_p, tb]
    h = jnp.dot(w1_ref[...], sa, preferred_element_type=jnp.float32)  # [Hc, tb]
    h = jnp.maximum(h + b1_ref[...], 0.0)
    h = jnp.dot(w2_ref[...], h, preferred_element_type=jnp.float32)   # [Hc, tb]
    h = jnp.maximum(h + b2_ref[...], 0.0)
    q = jnp.dot(w3_ref[...], h, preferred_element_type=jnp.float32)   # [8, tb]
    q = q + b3_ref[...]
    q_ref[...] = q.astype(q_ref.dtype)


def prepare_critic_params(raw, state_dim, action_dim):
    """One-time layout work: pack both Q-heads block-diagonally into a single
    feature-major (y = W @ x) weight set, zero-padded to TPU-friendly shapes."""
    hid = raw["w1"].shape[0]
    sa_dim = state_dim + action_dim
    sa_p = _round_up(sa_dim, 8)
    Hc = _round_up(2 * hid, LANE)  # combined hidden width for both heads

    f32 = jnp.float32
    # First layer: rows [0,hid) -> Q1 hidden, rows [hid,2*hid) -> Q2 hidden.
    w1c = jnp.zeros((Hc, sa_p), f32)
    w1c = w1c.at[:hid, :sa_dim].set(raw["w1"].astype(f32))
    w1c = w1c.at[hid:2 * hid, :sa_dim].set(raw["w4"].astype(f32))
    b1c = jnp.zeros((Hc, 1), f32)
    b1c = b1c.at[:hid, 0].set(raw["b1"].astype(f32))
    b1c = b1c.at[hid:2 * hid, 0].set(raw["b4"].astype(f32))

    # Second layer: block-diagonal so the two heads never mix.
    w2c = jnp.zeros((Hc, Hc), f32)
    w2c = w2c.at[:hid, :hid].set(raw["w2"].astype(f32))
    w2c = w2c.at[hid:2 * hid, hid:2 * hid].set(raw["w5"].astype(f32))
    b2c = jnp.zeros((Hc, 1), f32)
    b2c = b2c.at[:hid, 0].set(raw["b2"].astype(f32))
    b2c = b2c.at[hid:2 * hid, 0].set(raw["b5"].astype(f32))

    # Output layer: q1 in row 0 (reads Q1 lanes), q2 in row 1 (reads Q2 lanes).
    w3c = jnp.zeros((Q_ROWS, Hc), f32)
    w3c = w3c.at[0, :hid].set(raw["w3"][0].astype(f32))
    w3c = w3c.at[1, hid:2 * hid].set(raw["w6"][0].astype(f32))
    b3c = jnp.zeros((Q_ROWS, 1), f32)
    b3c = b3c.at[0, 0].set(raw["b3"][0].astype(f32))
    b3c = b3c.at[1, 0].set(raw["b6"][0].astype(f32))

    return (w1c, b1c, w2c, b2c, w3c, b3c)


@jax.jit
def critic_forward(state, action, params):
    """state: [B, state_dim], action: [B, action_dim];
    params from prepare_critic_params.  Returns (q1, q2), each [B, 1]."""
    w1c, b1c, w2c, b2c, w3c, b3c = params
    B, state_dim = state.shape
    action_dim = action.shape[1]
    sa_dim = state_dim + action_dim
    Hc, sa_p = w1c.shape

    # Pad batch to a multiple of 128 so every tile is lane-dense; pick the
    # largest tile in {512, 256, 128} that divides the padded batch (amortizes
    # the ~0.35us/step grid overhead and feeds the 256-wide MXU on v6e/v7x).
    Bp = _round_up(B, LANE)
    if Bp % 512 == 0:
        tb = 512
    elif Bp % 256 == 0:
        tb = 256
    else:
        tb = 128
    grid = (Bp // tb,)

    # One-time per-call layout (cheap XLA ops, fused in this jit): concat state
    # and action (replaces the sa-concat inside the kernel), zero-pad, transpose
    # to feature-major [sa_p, Bp] so batch sits on the lane axis.
    sa = jnp.concatenate([state, action], axis=1)
    sa_t = jnp.pad(sa, ((0, Bp - B), (0, sa_p - sa_dim))).T  # [sa_p, Bp]

    weights = (w1c, b1c, w2c, b2c, w3c, b3c)

    flops = 2 * Bp * (sa_p * Hc + Hc * Hc + Hc * Q_ROWS)
    bytes_accessed = 4 * (int(sa_t.size) + Q_ROWS * Bp
                          + sum(int(w.size) for w in weights))

    q = pl.pallas_call(
        critic_kernel,
        out_shape=jax.ShapeDtypeStruct((Q_ROWS, Bp), jnp.float32),
        grid=grid,
        in_specs=[pl.BlockSpec((sa_p, tb), lambda i: (0, i))]
                 + [pl.BlockSpec(w.shape, lambda i: (0, 0)) for w in weights],
        out_specs=pl.BlockSpec((Q_ROWS, tb), lambda i: (0, i)),
        compiler_params=pltpu.CompilerParams(
            dimension_semantics=("parallel",)),
        cost_estimate=pl.CostEstimate(flops=flops, transcendentals=0,
                                      bytes_accessed=bytes_accessed),
    )(sa_t, *weights)

    # Row 0 = q1, row 1 = q2; slice away batch padding (fuses into this jit).
    q1 = q[0, :B][:, None]
    q2 = q[1, :B][:, None]
    return q1, q2


def init_critic_params(key, state_dim, action_dim, noHidNeurons,
                       epsilonHid1, epsilonHid2):
    """Deterministic synthetic init mimicking nn.Linear + Erdos-Renyi sparse
    masks (static sparsity applied once at init, as in the PyTorch module)."""
    # NOTE: sp.initializeEpsilonWeightsMask is approximated by a Bernoulli
    # Erdos-Renyi mask; this is init-time only and does not affect the forward.
    sa_dim = state_dim + action_dim
    keys = jax.random.split(key, 16)

    def linear_init(kw, kb, fan_in, fan_out):
        bound = 1.0 / np.sqrt(fan_in)
        w = jax.random.uniform(kw, (fan_out, fan_in), jnp.float32, -bound, bound)
        b = jax.random.uniform(kb, (fan_out,), jnp.float32, -bound, bound)
        return w, b

    def er_mask(k, eps, n_in, n_out):
        p = min(1.0, eps * (n_in + n_out) / (n_in * n_out))
        return jax.random.bernoulli(k, p, (n_out, n_in)).astype(jnp.float32)

    w1, b1 = linear_init(keys[0], keys[1], sa_dim, noHidNeurons)
    m1 = er_mask(keys[2], epsilonHid1, sa_dim, noHidNeurons)
    w2, b2 = linear_init(keys[3], keys[4], noHidNeurons, noHidNeurons)
    m2 = er_mask(keys[5], epsilonHid2, noHidNeurons, noHidNeurons)
    w3, b3 = linear_init(keys[6], keys[7], noHidNeurons, 1)

    w4, b4 = linear_init(keys[8], keys[9], sa_dim, noHidNeurons)
    m4 = er_mask(keys[10], epsilonHid1, sa_dim, noHidNeurons)
    w5, b5 = linear_init(keys[11], keys[12], noHidNeurons, noHidNeurons)
    m5 = er_mask(keys[13], epsilonHid2, noHidNeurons, noHidNeurons)
    w6, b6 = linear_init(keys[14], keys[15], noHidNeurons, 1)

    return {
        "w1": w1 * m1, "b1": b1, "w2": w2 * m2, "b2": b2, "w3": w3, "b3": b3,
        "w4": w4 * m4, "b4": b4, "w5": w5 * m5, "b5": b5, "w6": w6, "b6": b6,
    }


def critic_ref(state, action, raw):
    """Pure-JAX reference (mirrors the PyTorch forward)."""
    sa = jnp.concatenate([state, action], axis=1)
    q1 = jnp.maximum(sa @ raw["w1"].T + raw["b1"], 0.0)
    q1 = jnp.maximum(q1 @ raw["w2"].T + raw["b2"], 0.0)
    q1 = q1 @ raw["w3"].T + raw["b3"]
    q2 = jnp.maximum(sa @ raw["w4"].T + raw["b4"], 0.0)
    q2 = jnp.maximum(q2 @ raw["w5"].T + raw["b5"], 0.0)
    q2 = q2 @ raw["w6"].T + raw["b6"]
    return q1, q2


if __name__ == "__main__":
    state_dim = 16
    action_dim = 8
    noHidNeurons = 32
    epsilonHid1 = 8.0
    epsilonHid2 = 8.0

    key = jax.random.PRNGKey(0)
    k_params, k_data = jax.random.split(key, 2)
    raw = init_critic_params(k_params, state_dim, action_dim,
                             noHidNeurons, epsilonHid1, epsilonHid2)
    params = prepare_critic_params(raw, state_dim, action_dim)

    # Check both the tiny-batch path (B=8 -> padded to one 128-wide tile) and a
    # non-128-divisible multi-tile path (B=300 -> padded to 384, grid=(3,)).
    for B in (8, 300):
        ks, ka = jax.random.split(jax.random.fold_in(k_data, B), 2)
        state = jax.random.normal(ks, (B, state_dim), jnp.float32)
        action = jax.random.normal(ka, (B, action_dim), jnp.float32)

        q1, q2 = critic_forward(state, action, params)
        q1 = jax.block_until_ready(q1)
        q2 = jax.block_until_ready(q2)

        r1, r2 = critic_ref(state, action, raw)
        r1, r2 = jax.block_until_ready((r1, r2))

        np.testing.assert_allclose(np.asarray(q1), np.asarray(r1),
                                   rtol=2e-5, atol=2e-5)
        np.testing.assert_allclose(np.asarray(q2), np.asarray(r2),
                                   rtol=2e-5, atol=2e-5)

    print("KERNEL_OK")
</pallas_src>

<mosaic_0001>
module attributes {stable_mosaic.version = 11 : i64} {
  func.func @critic_kernel(%arg0: i32, %arg1: memref<24x128xf32, #tpu.memory_space<vmem>>, %arg2: memref<128x24xf32, #tpu.memory_space<vmem>>, %arg3: memref<128x1xf32, #tpu.memory_space<vmem>>, %arg4: memref<128x128xf32, #tpu.memory_space<vmem>>, %arg5: memref<128x1xf32, #tpu.memory_space<vmem>>, %arg6: memref<8x128xf32, #tpu.memory_space<vmem>>, %arg7: memref<8x1xf32, #tpu.memory_space<vmem>>, %arg8: memref<8x128xf32, #tpu.memory_space<vmem>>) attributes {dimension_semantics = [#tpu.dimension_semantics<parallel>], iteration_bounds = array<i64: 1>, scalar_prefetch = 0 : i64, scratch_operands = 0 : i64, tpu.core_type = #tpu.core_type<tc>, window_params = [{transform_indices = @transform_0, window_bounds = array<i64: 24, 128>}, {pipeline_mode = #tpu.pipeline_mode<synchronous>, transform_indices = @transform_1, window_bounds = array<i64: 128, 24>}, {pipeline_mode = #tpu.pipeline_mode<synchronous>, transform_indices = @transform_2, window_bounds = array<i64: 128, 1>}, {pipeline_mode = #tpu.pipeline_mode<synchronous>, transform_indices = @transform_3, window_bounds = array<i64: 128, 128>}, {pipeline_mode = #tpu.pipeline_mode<synchronous>, transform_indices = @transform_4, window_bounds = array<i64: 128, 1>}, {pipeline_mode = #tpu.pipeline_mode<synchronous>, transform_indices = @transform_5, window_bounds = array<i64: 8, 128>}, {pipeline_mode = #tpu.pipeline_mode<synchronous>, transform_indices = @transform_6, window_bounds = array<i64: 8, 1>}, {transform_indices = @transform_7, window_bounds = array<i64: 8, 128>}]} {
    %c0 = arith.constant 0 : index
    %c0_0 = arith.constant 0 : index
    %0 = vector.load %arg1[%c0, %c0_0] : memref<24x128xf32, #tpu.memory_space<vmem>>, vector<24x128xf32>
    %c0_1 = arith.constant 0 : index
    %c0_2 = arith.constant 0 : index
    %1 = vector.load %arg2[%c0_1, %c0_2] : memref<128x24xf32, #tpu.memory_space<vmem>>, vector<128x24xf32>
    %cst = arith.constant dense<0.000000e+00> : vector<128x128xf32>
    %2 = tpu.matmul %1, %0, %cst {dimension_numbers = #tpu.dot_dimension_numbers<[1], [0], [0], [1], [0, 0, 1, 1], [], []>} : vector<128x24xf32>, vector<24x128xf32>, vector<128x128xf32> -> vector<128x128xf32>
    %c0_3 = arith.constant 0 : index
    %c0_4 = arith.constant 0 : index
    %3 = vector.load %arg3[%c0_3, %c0_4] : memref<128x1xf32, #tpu.memory_space<vmem>>, vector<128x1xf32>
    %4 = vector.broadcast %3 : vector<128x1xf32> to vector<128x128xf32>
    %5 = arith.addf %2, %4 : vector<128x128xf32>
    %cst_5 = arith.constant 0.000000e+00 : f32
    %6 = vector.broadcast %cst_5 : f32 to vector<128x128xf32>
    %7 = arith.maximumf %5, %6 : vector<128x128xf32>
    %c0_6 = arith.constant 0 : index
    %c0_7 = arith.constant 0 : index
    %8 = vector.load %arg4[%c0_6, %c0_7] : memref<128x128xf32, #tpu.memory_space<vmem>>, vector<128x128xf32>
    %cst_8 = arith.constant dense<0.000000e+00> : vector<128x128xf32>
    %9 = tpu.matmul %8, %7, %cst_8 {dimension_numbers = #tpu.dot_dimension_numbers<[1], [0], [0], [1], [0, 0, 1, 1], [], []>} : vector<128x128xf32>, vector<128x128xf32>, vector<128x128xf32> -> vector<128x128xf32>
    %c0_9 = arith.constant 0 : index
    %c0_10 = arith.constant 0 : index
    %10 = vector.load %arg5[%c0_9, %c0_10] : memref<128x1xf32, #tpu.memory_space<vmem>>, vector<128x1xf32>
    %11 = vector.broadcast %10 : vector<128x1xf32> to vector<128x128xf32>
    %12 = arith.addf %9, %11 : vector<128x128xf32>
    %cst_11 = arith.constant 0.000000e+00 : f32
    %13 = vector.broadcast %cst_11 : f32 to vector<128x128xf32>
    %14 = arith.maximumf %12, %13 : vector<128x128xf32>
    %c0_12 = arith.constant 0 : index
    %c0_13 = arith.constant 0 : index
    %15 = vector.load %arg6[%c0_12, %c0_13] : memref<8x128xf32, #tpu.memory_space<vmem>>, vector<8x128xf32>
    %cst_14 = arith.constant dense<0.000000e+00> : vector<8x128xf32>
    %16 = tpu.matmul %15, %14, %cst_14 {dimension_numbers = #tpu.dot_dimension_numbers<[1], [0], [0], [1], [0, 0, 1, 1], [], []>} : vector<8x128xf32>, vector<128x128xf32>, vector<8x128xf32> -> vector<8x128xf32>
    %c0_15 = arith.constant 0 : index
    %c0_16 = arith.constant 0 : index
    %17 = vector.load %arg7[%c0_15, %c0_16] : memref<8x1xf32, #tpu.memory_space<vmem>>, vector<8x1xf32>
    %18 = vector.broadcast %17 : vector<8x1xf32> to vector<8x128xf32>
    %19 = arith.addf %16, %18 : vector<8x128xf32>
    %c0_17 = arith.constant 0 : index
    %c0_18 = arith.constant 0 : index
    %20 = vector.load %arg8[%c0_17, %c0_18] : memref<8x128xf32, #tpu.memory_space<vmem>>, vector<8x128xf32>
    tpu.vector_store %arg8[%c0_17, %c0_18], %19 {strides = array<i32>} : memref<8x128xf32, #tpu.memory_space<vmem>>, vector<8x128xf32>,
    return
  }
  func.func @transform_0(%arg0: i32) -> (i32, i32) {
    %c0_i32 = arith.constant 0 : i32
    %c0_i32_0 = arith.constant 0 : i32
    return %c0_i32, %arg0 : i32, i32
  }
  func.func @transform_1(%arg0: i32) -> (i32, i32) {
    %c0_i32 = arith.constant 0 : i32
    %c0_i32_0 = arith.constant 0 : i32
    %c0_i32_1 = arith.constant 0 : i32
    return %c0_i32, %c0_i32_0 : i32, i32
  }
  func.func @transform_2(%arg0: i32) -> (i32, i32) {
    %c0_i32 = arith.constant 0 : i32
    %c0_i32_0 = arith.constant 0 : i32
    %c0_i32_1 = arith.constant 0 : i32
    return %c0_i32, %c0_i32_0 : i32, i32
  }
  func.func @transform_3(%arg0: i32) -> (i32, i32) {
    %c0_i32 = arith.constant 0 : i32
    %c0_i32_0 = arith.constant 0 : i32
    %c0_i32_1 = arith.constant 0 : i32
    return %c0_i32, %c0_i32_0 : i32, i32
  }
  func.func @transform_4(%arg0: i32) -> (i32, i32) {
    %c0_i32 = arith.constant 0 : i32
    %c0_i32_0 = arith.constant 0 : i32
    %c0_i32_1 = arith.constant 0 : i32
    return %c0_i32, %c0_i32_0 : i32, i32
  }
  func.func @transform_5(%arg0: i32) -> (i32, i32) {
    %c0_i32 = arith.constant 0 : i32
    %c0_i32_0 = arith.constant 0 : i32
    %c0_i32_1 = arith.constant 0 : i32
    return %c0_i32, %c0_i32_0 : i32, i32
  }
  func.func @transform_6(%arg0: i32) -> (i32, i32) {
    %c0_i32 = arith.constant 0 : i32
    %c0_i32_0 = arith.constant 0 : i32
    %c0_i32_1 = arith.constant 0 : i32
    return %c0_i32, %c0_i32_0 : i32, i32
  }
  func.func @transform_7(%arg0: i32) -> (i32, i32) {
    %c0_i32 = arith.constant 0 : i32
    %c0_i32_0 = arith.constant 0 : i32
    return %c0_i32, %arg0 : i32, i32
  }
}

</mosaic_0001>

<bundles_post_ra>
// kernel: critic_forward.1
= control target key start
LH: loop header
LB: loop body
LE: loop exit
PB: predicated region body
PF: predicated region fallthrough
CT: control target
= control target key end

     0   :  { %v535_v0 = vmov 0   ;;  %vm141_vm0 = vcmask 195584   ;;  %s820_s2 = inlined_call_operand.vmem [shape: f32[128,1], index: 2, kind: input, shape index: {}]   ;;  %s821_s0 = inlined_call_operand.vmem [shape: f32[24,128], index: 0, kind: input, shape index: {}]   ;;  %s822_s1 = inlined_call_operand.vmem [shape: f32[128,24], index: 1, kind: input, shape index: {}]   ;;  %s823_s4 = inlined_call_operand.vmem [shape: f32[128,1], index: 4, kind: input, shape index: {}]   ;;  %s824_s6 = inlined_call_operand.vmem [shape: f32[8,1], index: 6, kind: input, shape index: {}]   ;;  %s825_s3 = inlined_call_operand.vmem [shape: f32[128,128], index: 3, kind: input, shape index: {}]   ;;  %s826_s5 = inlined_call_operand.vmem [shape: f32[8,128], index: 5, kind: input, shape index: {}]   ;;  %s827_s7 = inlined_call_operand.vmem [shape: f32[8,128], index: 7, kind: output, shape index: {}]  }
   0x1   :  { %533 = vset.pattern.permute.xlu1 %v535_v0  ;;  %532 = vset.pattern.permute.xlu0 %v535_v0  ;;  %v60_v1 = vld [vmem:[%s820_s2 + $0x78] sm:$0xff]  ;;  %v58_v2 = vld [vmem:[%s820_s2 + $0x68] sm:$0xff]  ;;  %v28_v3 = vld [vmem:[%s821_s0 + $0x10] sm:$0xff] }
   0x2   :  { %138 = vperm.xlu0 %532, %v60_v1   ;;  %128 = vperm.xlu1 %533, %v58_v2   ;;  %v27_v4 = vld [vmem:[%s821_s0 + $0x8] sm:$0xff]  ;;  %v26_v5 = vld [vmem:[%s821_s0] sm:$0xff]  ;;  %v56_v6 = vld [vmem:[%s820_s2 + $0x58] sm:$0xff] }
   0x3   :  { %203 = vmatpush.msra.mxu0 %v28_v3  ;;  %512 = vmatpush.msra.mxu2 %v28_v3  ;;  %v29_v7 = vld [vmem:[%s822_s1] sm:$0xff]  ;;  %v39_v8 = vld [vmem:[%s822_s1 + $0x50] sm:$0xff]  ;;  %v30_v12 = vld [vmem:[%s822_s1 + $0x8] sm:$0xff] }
   0x4   :  { %534 = vset.pattern.permute.xlu2 %v535_v0  ;;  %v59_v9 = vld [vmem:[%s820_s2 + $0x70] sm:$0xff]  ;;  %v57_v10 = vld [vmem:[%s820_s2 + $0x60] sm:$0xff]  ;;  %v40_v13 = vld [vmem:[%s822_s1 + $0x58] sm:$0xff] }
   0x5   :  { %204 = vmatpush.msra.mxu0 %v27_v4  ;;  %513 = vmatpush.msra.mxu2 %v27_v4  ;;  %v55_v11 = vld [vmem:[%s820_s2 + $0x50] sm:$0xff]  ;;  %v54_v14 = vld [vmem:[%s820_s2 + $0x48] sm:$0xff]  ;;  %v53_v15 = vld [vmem:[%s820_s2 + $0x40] sm:$0xff] }
   0x6   :  { %118 = vperm.xlu2 %534, %v56_v6   ;;  %v52_v16 = vld [vmem:[%s820_s2 + $0x38] sm:$0xff]  ;;  %v31_v17 = vld [vmem:[%s822_s1 + $0x10] sm:$0xff]  ;;  %v41_v18 = vld [vmem:[%s822_s1 + $0x60] sm:$0xff] }
   0x7   :  { %205 = vmatpush.msra.mxu0 %v26_v5  ;;  %514 = vmatpush.msra.mxu2 %v26_v5  ;;  %v51_v19 = vld [vmem:[%s820_s2 + $0x30] sm:$0xff]  ;;  %v50_v20 = vld [vmem:[%s820_s2 + $0x28] sm:$0xff]  ;;  %v49_v21 = vld [vmem:[%s820_s2 + $0x20] sm:$0xff] }
   0x8   :  { %496 = vmatmul.msk.f32.vlgmr.msra.gmra.mxu0 %vm141_vm0, %v29_v7  ;;  %506 = vmatmul.msk.f32.vlgmr.msra.gmra.mxu2 %vm141_vm0, %v39_v8  ;;  %v32_v22 = vld [vmem:[%s822_s1 + $0x18] sm:$0xff]  ;;  %v42_v23 = vld [vmem:[%s822_s1 + $0x68] sm:$0xff]  ;;  %v47_v25 = vld [vmem:[%s820_s2 + $0x10] sm:$0xff] }
   0x9   :  { %v48_v24 = vld [vmem:[%s820_s2 + $0x18] sm:$0xff]  ;;  %v46_v26 = vld [vmem:[%s820_s2 + $0x8] sm:$0xff]  ;;  %v33_v27 = vld [vmem:[%s822_s1 + $0x20] sm:$0xff] }
   0xa   :  { %133 = vperm.xlu0 %532, %v59_v9   ;;  %123 = vperm.xlu1 %533, %v57_v10   ;;  %v43_v28 = vld [vmem:[%s822_s1 + $0x70] sm:$0xff]  ;;  %v302_v29 = vld [vmem:[%s823_s4 + $0x78] sm:$0xff]  ;;  %v45_v30 = vld [vmem:[%s820_s2] sm:$0xff] }
   0xb   :  { %v301_v31 = vld [vmem:[%s823_s4 + $0x70] sm:$0xff]  ;;  %v34_v32 = vld [vmem:[%s822_s1 + $0x28] sm:$0xff]  ;;  %v44_v33 = vld [vmem:[%s822_s1 + $0x78] sm:$0xff] }
   0xc   :  { %v299_v34 = vld [vmem:[%s823_s4 + $0x60] sm:$0xff]  ;;  %v300_v35 = vld [vmem:[%s823_s4 + $0x68] sm:$0xff]  ;;  %v298_v36 = vld [vmem:[%s823_s4 + $0x58] sm:$0xff] }
   0xd   :  { %v35_v37 = vld [vmem:[%s822_s1 + $0x30] sm:$0xff]  ;;  %v296_v38 = vld [vmem:[%s823_s4 + $0x48] sm:$0xff]  ;;  %v295_v40 = vld [vmem:[%s823_s4 + $0x40] sm:$0xff] }
   0xe   :  { %113 = vperm.xlu2 %534, %v55_v11   ;;  %v297_v39 = vld [vmem:[%s823_s4 + $0x50] sm:$0xff]  ;;  %v36_v41 = vld [vmem:[%s822_s1 + $0x38] sm:$0xff]  ;;  %v292_v44 = vld [vmem:[%s823_s4 + $0x28] sm:$0xff] }
   0xf   :  { %v293_v42 = vld [vmem:[%s823_s4 + $0x30] sm:$0xff]  ;;  %v294_v43 = vld [vmem:[%s823_s4 + $0x38] sm:$0xff]  ;;  %v37_v45 = vld [vmem:[%s822_s1 + $0x40] sm:$0xff] }
  0x10   :  { %497 = vmatmul.msk.f32.gmra.mxu0 %vm141_vm0, %v30_v12  ;;  %507 = vmatmul.msk.f32.gmra.mxu2 %vm141_vm0, %v40_v13  ;;  %v290_v46 = vld [vmem:[%s823_s4 + $0x18] sm:$0xff]  ;;  %v291_v47 = vld [vmem:[%s823_s4 + $0x20] sm:$0xff]  ;;  %v289_v48 = vld [vmem:[%s823_s4 + $0x10] sm:$0xff] }
  0x11   :  { %v38_v49 = vld [vmem:[%s822_s1 + $0x48] sm:$0xff]  ;;  %v287_v50 = vld [vmem:[%s823_s4] sm:$0xff] }
  0x12   :  { %108 = vperm.xlu0 %532, %v54_v14   ;;  %103 = vperm.xlu1 %533, %v53_v15   ;;  %v288_v51 = vld [vmem:[%s823_s4 + $0x8] sm:$0xff]  ;;  %v465_v52 = vld [vmem:[%s824_s6] sm:$0xff] }
  0x16   :  { %98 = vperm.xlu2 %534, %v52_v16  }
  0x18   :  { %498 = vmatmul.msk.f32.gmra.mxu0 %vm141_vm0, %v31_v17  ;;  %508 = vmatmul.msk.f32.gmra.mxu2 %vm141_vm0, %v41_v18 }
  0x1a   :  { %93 = vperm.xlu0 %532, %v51_v19   ;;  %88 = vperm.xlu1 %533, %v50_v20  }
  0x1e   :  { %83 = vperm.xlu2 %534, %v49_v21  }
  0x20   :  { %499 = vmatmul.msk.f32.gmra.mxu0 %vm141_vm0, %v32_v22  ;;  %509 = vmatmul.msk.f32.gmra.mxu2 %vm141_vm0, %v42_v23 }
  0x22   :  { %78 = vperm.xlu0 %532, %v48_v24   ;;  %73 = vperm.xlu1 %533, %v47_v25  }
  0x26   :  { %68 = vperm.xlu2 %534, %v46_v26  }
  0x28   :  { %500 = vmatmul.msk.f32.gmra.mxu0 %vm141_vm0, %v33_v27  ;;  %510 = vmatmul.msk.f32.gmra.mxu2 %vm141_vm0, %v43_v28 }
  0x2a   :  { %380 = vperm.xlu1 %533, %v302_v29   ;;  %63 = vperm.xlu0 %532, %v45_v30  }
  0x2e   :  { %375 = vperm.xlu2 %534, %v301_v31  }
  0x30   :  { %501 = vmatmul.msk.f32.gmra.mxu0 %vm141_vm0, %v34_v32  ;;  %511 = vmatmul.msk.f32.gmra.mxu2 %vm141_vm0, %v44_v33 }
  0x32   :  { %365 = vperm.xlu1 %533, %v299_v34   ;;  %370 = vperm.xlu0 %532, %v300_v35  }
  0x36   :  { %360 = vperm.xlu2 %534, %v298_v36  }
  0x38   :  { %502 = vmatmul.msk.f32.gmra.mxu0 %vm141_vm0, %v35_v37 }
  0x3a   :  { %350 = vperm.xlu1 %533, %v296_v38   ;;  %355 = vperm.xlu0 %532, %v297_v39  }
  0x3e   :  { %345 = vperm.xlu2 %534, %v295_v40  }
  0x40   :  { %503 = vmatmul.msk.f32.gmra.mxu0 %vm141_vm0, %v36_v41 }
  0x42   :  { %335 = vperm.xlu1 %533, %v293_v42   ;;  %340 = vperm.xlu0 %532, %v294_v43  }
  0x46   :  { %330 = vperm.xlu2 %534, %v292_v44  }
  0x48   :  { %504 = vmatmul.msk.f32.gmra.mxu0 %vm141_vm0, %v37_v45 }
  0x4a   :  { %320 = vperm.xlu1 %533, %v290_v46   ;;  %325 = vperm.xlu0 %532, %v291_v47  }
  0x4e   :  { %315 = vperm.xlu2 %534, %v289_v48  }
  0x50   :  { %505 = vmatmul.msk.f32.gmra.mxu0 %vm141_vm0, %v38_v49 }
  0x52   :  { %305 = vperm.xlu1 %533, %v287_v50   ;;  %310 = vperm.xlu0 %532, %v288_v51  }
  0x56   :  { %468 = vperm.xlu2 %534, %v465_v52  }
  0x60   :  { %v119_v2 = vpop.permute.xlu2 %118 }
  0x68   :  { %v114_v15 = vpop.permute.xlu2 %113 }
  0x70   :  { %v99_v23 = vpop.permute.xlu2 %98 }
  0x74   :  { %v139_v62 = vpop.permute.xlu0 %138  ;;  %v129_v0 = vpop.permute.xlu1 %128 }
  0x78   :  { %v84_v30 = vpop.permute.xlu2 %83 }
  0x7c   :  { %v134_v3 = vpop.permute.xlu0 %133  ;;  %v124_v11 = vpop.permute.xlu1 %123 }
  0x80   :  { %v69_v43 = vpop.permute.xlu2 %68 }
  0x84   :  { %v109_v18 = vpop.permute.xlu0 %108  ;;  %v104_v22 = vpop.permute.xlu1 %103 }
  0x85   :  { %v748_v53 = vpop.f32.mrf.mxu0 }
  0x8b   :  { %v237_v54 = vpop.f32.mrf.mxu2 }
  0x8c   :  { %v238_v16 = vadd.f32 %v237_v54, %v114_v15  ;;  %v94_v25 = vpop.permute.xlu0 %93  ;;  %v89_v26 = vpop.permute.xlu1 %88  ;;  %v271_v54 = vld [vmem:[%s825_s3] sm:$0xff] }
  0x8d   :  { %v750_v55 = vpop.f32.mrf.mxu0 }
  0x8e   :  { %v265_v21 = vmax.f32 %v238_v16, 0.0  ;;  %v211_v47 = vadd.f32 %v750_v55, %v69_v43  ;;  %v279_v55 = vld [vmem:[%s825_s3 + $0x40] sm:$0xff]  ;;  %v376_v16 = vpop.permute.xlu2 %375 }
  0x90   :  { %v256_v51 = vmax.f32 %v211_v47, 0.0 }
  0x93   :  { %v240_v56 = vpop.f32.mrf.mxu2 }
  0x94   :  { %v241_v13 = vadd.f32 %v240_v56, %v119_v2  ;;  %v79_v33 = vpop.permute.xlu0 %78  ;;  %v74_v40 = vpop.permute.xlu1 %73  ;;  %v280_v56 = vld [vmem:[%s825_s3 + $0x48] sm:$0xff]  ;;  %v285_v2 = vld [vmem:[%s825_s3 + $0x70] sm:$0xff] }
  0x95   :  { %v752_v57 = vpop.f32.mrf.mxu0 }
  0x96   :  { %v266_v20 = vmax.f32 %v241_v13, 0.0  ;;  %v214_v44 = vadd.f32 %v752_v57, %v74_v40  ;;  %v273_v57 = vld [vmem:[%s825_s3 + $0x10] sm:$0xff] }
  0x98   :  { %v257_v49 = vmax.f32 %v214_v44, 0.0 }
  0x9b   :  { %v243_v58 = vpop.f32.mrf.mxu2 }
  0x9c   :  { %v244_v12 = vadd.f32 %v243_v58, %v124_v11  ;;  %v64_v46 = vpop.permute.xlu0 %63  ;;  %v281_v58 = vld [vmem:[%s825_s3 + $0x50] sm:$0xff] }
  0x9d   :  { %v754_v59 = vpop.f32.mrf.mxu0  ;;  %v208_v50 = vadd.f32 %v748_v53, %v64_v46  ;;  %v272_v53 = vld [vmem:[%s825_s3 + $0x8] sm:$0xff] }
  0x9e   :  { %v267_v17 = vmax.f32 %v244_v12, 0.0  ;;  %v217_v41 = vadd.f32 %v754_v59, %v79_v33  ;;  %v274_v59 = vld [vmem:[%s825_s3 + $0x18] sm:$0xff] }
  0x9f   :  { %v255_v52 = vmax.f32 %v208_v50, 0.0 }
  0xa0   :  { %v258_v48 = vmax.f32 %v217_v41, 0.0 }
  0xa3   :  { %v246_v60 = vpop.f32.mrf.mxu2 }
  0xa4   :  { %v247_v8 = vadd.f32 %v246_v60, %v129_v0  ;;  %v282_v60 = vld [vmem:[%s825_s3 + $0x58] sm:$0xff]  ;;  %v284_v0 = vld [vmem:[%s825_s3 + $0x68] sm:$0xff] }
  0xa5   :  { %v219_v61 = vpop.f32.mrf.mxu0 }
  0xa6   :  { %v268_v14 = vmax.f32 %v247_v8, 0.0  ;;  %v220_v38 = vadd.f32 %v219_v61, %v84_v30  ;;  %v275_v61 = vld [vmem:[%s825_s3 + $0x20] sm:$0xff] }
  0xa8   :  { %v259_v45 = vmax.f32 %v220_v38, 0.0 }
  0xab   :  { %v249_v63 = vpop.f32.mrf.mxu2 }
  0xac   :  { %v250_v4 = vadd.f32 %v249_v63, %v134_v3  ;;  %v276_v63 = vld [vmem:[%s825_s3 + $0x28] sm:$0xff]  ;;  %v278_v3 = vld [vmem:[%s825_s3 + $0x38] sm:$0xff] }
  0xad   :  { %v222_v1 = vpop.f32.mrf.mxu0 }
  0xae   :  { %v269_v9 = vmax.f32 %v250_v4, 0.0  ;;  %v223_v36 = vadd.f32 %v222_v1, %v89_v26  ;;  %v277_v1 = vld [vmem:[%s825_s3 + $0x30] sm:$0xff]  ;;  %v286_v4 = vld [vmem:[%s825_s3 + $0x78] sm:$0xff] }
  0xb0   :  { %v260_v42 = vmax.f32 %v223_v36, 0.0 }
  0xb3   :  { %v252_v5 = vpop.f32.mrf.mxu2 }
  0xb4   :  { %v253_v6 = vadd.f32 %v252_v5, %v139_v62  ;;  %v283_v62 = vld [vmem:[%s825_s3 + $0x60] sm:$0xff] }
  0xb5   :  { %v225_v7 = vpop.f32.mrf.mxu0 }
  0xb6   :  { %v270_v10 = vmax.f32 %v253_v6, 0.0  ;;  %v226_v34 = vadd.f32 %v225_v7, %v94_v25 }
  0xb8   :  { %383 = vmatpush.msra.mxu1 %v270_v10  ;;  %515 = vmatpush.msra.mxu3 %v270_v10  ;;  %v261_v39 = vmax.f32 %v226_v34, 0.0 }
  0xba   :  { %384 = vmatpush.msra.mxu1 %v269_v9  ;;  %516 = vmatpush.msra.mxu3 %v269_v9 }
  0xbc   :  { %385 = vmatpush.msra.mxu1 %v268_v14  ;;  %517 = vmatpush.msra.mxu3 %v268_v14  ;;  %v381_v14 = vpop.permute.xlu1 %380 }
  0xbd   :  { %v228_v19 = vpop.f32.mrf.mxu0 }
  0xbe   :  { %386 = vmatpush.msra.mxu1 %v267_v17  ;;  %518 = vmatpush.msra.mxu3 %v267_v17  ;;  %v229_v31 = vadd.f32 %v228_v19, %v99_v23 }
  0xc0   :  { %387 = vmatpush.msra.mxu1 %v266_v20  ;;  %519 = vmatpush.msra.mxu3 %v266_v20  ;;  %v262_v37 = vmax.f32 %v229_v31, 0.0 }
  0xc2   :  { %388 = vmatpush.msra.mxu1 %v265_v21  ;;  %520 = vmatpush.msra.mxu3 %v265_v21 }
  0xc4   :  { %v366_v19 = vpop.permute.xlu1 %365 }
  0xc5   :  { %v231_v24 = vpop.f32.mrf.mxu0 }
  0xc6   :  { %v232_v28 = vadd.f32 %v231_v24, %v104_v22  ;;  %v361_v22 = vpop.permute.xlu2 %360 }
  0xc8   :  { %v263_v35 = vmax.f32 %v232_v28, 0.0 }
  0xcc   :  { %v351_v24 = vpop.permute.xlu1 %350 }
  0xcd   :  { %v234_v27 = vpop.f32.mrf.mxu0 }
  0xce   :  { %v235_v29 = vadd.f32 %v234_v27, %v109_v18  ;;  %v371_v18 = vpop.permute.xlu0 %370  ;;  %v346_v31 = vpop.permute.xlu2 %345 }
  0xd0   :  { %v264_v32 = vmax.f32 %v235_v29, 0.0 }
  0xd2   :  { %389 = vmatpush.msra.mxu1 %v264_v32  ;;  %521 = vmatpush.msra.mxu3 %v264_v32 }
  0xd4   :  { %390 = vmatpush.msra.mxu1 %v263_v35  ;;  %522 = vmatpush.msra.mxu3 %v263_v35 }
  0xd6   :  { %391 = vmatpush.msra.mxu1 %v262_v37  ;;  %523 = vmatpush.msra.mxu3 %v262_v37  ;;  %v356_v23 = vpop.permute.xlu0 %355  ;;  %v336_v37 = vpop.permute.xlu1 %335 }
  0xd8   :  { %392 = vmatpush.msra.mxu1 %v261_v39  ;;  %524 = vmatpush.msra.mxu3 %v261_v39 }
  0xda   :  { %393 = vmatpush.msra.mxu1 %v260_v42  ;;  %525 = vmatpush.msra.mxu3 %v260_v42 }
  0xdc   :  { %394 = vmatpush.msra.mxu1 %v259_v45  ;;  %526 = vmatpush.msra.mxu3 %v259_v45  ;;  %v331_v45 = vpop.permute.xlu2 %330 }
  0xde   :  { %395 = vmatpush.msra.mxu1 %v258_v48  ;;  %527 = vmatpush.msra.mxu3 %v258_v48  ;;  %v341_v34 = vpop.permute.xlu0 %340 }
  0xe0   :  { %396 = vmatpush.msra.mxu1 %v257_v49  ;;  %528 = vmatpush.msra.mxu3 %v257_v49 }
  0xe2   :  { %397 = vmatpush.msra.mxu1 %v256_v51  ;;  %529 = vmatpush.msra.mxu3 %v256_v51  ;;  %v321_v51 = vpop.permute.xlu1 %320 }
  0xe4   :  { %398 = vmatpush.msra.mxu1 %v255_v52  ;;  %530 = vmatpush.msra.mxu3 %v255_v52 }
  0xe5   :  { %399 = vmatmul.f32.vlgmr.msra.gmra.mxu1 %v271_v54  ;;  %423 = vmatmul.f32.vlgmr.msra.gmra.mxu3 %v279_v55 }
  0xe6   :  { %v326_v48 = vpop.permute.xlu0 %325 }
  0xed   :  { %402 = vmatmul.f32.gmra.mxu1 %v272_v53  ;;  %426 = vmatmul.f32.gmra.mxu3 %v280_v56 }
  0xf5   :  { %405 = vmatmul.f32.gmra.mxu1 %v273_v57  ;;  %429 = vmatmul.f32.gmra.mxu3 %v281_v58  ;;  %v316_v58 = vpop.permute.xlu2 %315 }
  0xfd   :  { %408 = vmatmul.f32.gmra.mxu1 %v274_v59  ;;  %432 = vmatmul.f32.gmra.mxu3 %v282_v60 }
 0x105   :  { %411 = vmatmul.f32.gmra.mxu1 %v275_v61  ;;  %435 = vmatmul.f32.gmra.mxu3 %v283_v62  ;;  %v311_v61 = vpop.permute.xlu0 %310 }
 0x10d   :  { %414 = vmatmul.f32.gmra.mxu1 %v276_v63  ;;  %438 = vmatmul.f32.gmra.mxu3 %v284_v0  ;;  %v306_v0 = vpop.permute.xlu1 %305 }
 0x115   :  { %417 = vmatmul.f32.gmra.mxu1 %v277_v1  ;;  %441 = vmatmul.f32.gmra.mxu3 %v285_v2 }
 0x11d   :  { %420 = vmatmul.f32.gmra.mxu1 %v278_v3  ;;  %444 = vmatmul.f32.gmra.mxu3 %v286_v4 }
 0x162   :  { %v808_v5 = vpop.f32.mrf.mxu1 }
 0x163   :  { %v401_v1 = vadd.f32 %v808_v5, %v306_v0 }
 0x165   :  { %v448_v4 = vmax.f32 %v401_v1, 0.0 }
 0x168   :  { %v424_v6 = vpop.f32.mrf.mxu3 }
 0x169   :  { %v425_v43 = vadd.f32 %v424_v6, %v346_v31  ;;  %v464_v6 = vld [vmem:[%s826_s5] sm:$0xff] }
 0x16a   :  { %v810_v7 = vpop.f32.mrf.mxu1 }
 0x16b   :  { %v456_v49 = vmax.f32 %v425_v43, 0.0  ;;  %v404_v62 = vadd.f32 %v810_v7, %v311_v61 }
 0x16d   :  { %v449_v3 = vmax.f32 %v404_v62, 0.0 }
 0x170   :  { %v427_v8 = vpop.f32.mrf.mxu3 }
 0x171   :  { %v428_v40 = vadd.f32 %v427_v8, %v351_v24  ;;  %v469_v8 = vpop.permute.xlu2 %468 }
 0x172   :  { %v406_v10 = vpop.f32.mrf.mxu1 }
 0x173   :  { %v457_v46 = vmax.f32 %v428_v40, 0.0  ;;  %v407_v59 = vadd.f32 %v406_v10, %v316_v58 }
 0x175   :  { %v450_v2 = vmax.f32 %v407_v59, 0.0 }
 0x178   :  { %v430_v9 = vpop.f32.mrf.mxu3 }
 0x179   :  { %v431_v38 = vadd.f32 %v430_v9, %v356_v23 }
 0x17a   :  { %v409_v12 = vpop.f32.mrf.mxu1 }
 0x17b   :  { %v458_v44 = vmax.f32 %v431_v38, 0.0  ;;  %v410_v56 = vadd.f32 %v409_v12, %v321_v51 }
 0x17d   :  { %v451_v63 = vmax.f32 %v410_v56, 0.0 }
 0x180   :  { %v433_v11 = vpop.f32.mrf.mxu3 }
 0x181   :  { %v434_v35 = vadd.f32 %v433_v11, %v361_v22 }
 0x182   :  { %v412_v15 = vpop.f32.mrf.mxu1 }
 0x183   :  { %v459_v41 = vmax.f32 %v434_v35, 0.0  ;;  %v413_v55 = vadd.f32 %v412_v15, %v326_v48 }
 0x185   :  { %v452_v60 = vmax.f32 %v413_v55, 0.0 }
 0x188   :  { %v436_v13 = vpop.f32.mrf.mxu3 }
 0x189   :  { %v437_v32 = vadd.f32 %v436_v13, %v366_v19 }
 0x18a   :  { %v415_v20 = vpop.f32.mrf.mxu1 }
 0x18b   :  { %v460_v39 = vmax.f32 %v437_v32, 0.0  ;;  %v416_v52 = vadd.f32 %v415_v20, %v331_v45 }
 0x18d   :  { %v453_v57 = vmax.f32 %v416_v52, 0.0 }
 0x190   :  { %v439_v17 = vpop.f32.mrf.mxu3 }
 0x191   :  { %v440_v29 = vadd.f32 %v439_v17, %v371_v18 }
 0x192   :  { %v418_v28 = vpop.f32.mrf.mxu1 }
 0x193   :  { %v461_v36 = vmax.f32 %v440_v29, 0.0  ;;  %v419_v50 = vadd.f32 %v418_v28, %v336_v37 }
 0x195   :  { %v454_v53 = vmax.f32 %v419_v50, 0.0 }
 0x198   :  { %v442_v21 = vpop.f32.mrf.mxu3 }
 0x199   :  { %v443_v26 = vadd.f32 %v442_v21, %v376_v16 }
 0x19a   :  { %v421_v42 = vpop.f32.mrf.mxu1 }
 0x19b   :  { %v462_v33 = vmax.f32 %v443_v26, 0.0  ;;  %v422_v47 = vadd.f32 %v421_v42, %v341_v34 }
 0x19d   :  { %v455_v54 = vmax.f32 %v422_v47, 0.0 }
 0x1a0   :  { %v445_v25 = vpop.f32.mrf.mxu3 }
 0x1a1   :  { %v446_v27 = vadd.f32 %v445_v25, %v381_v14 }
 0x1a3   :  { %v463_v30 = vmax.f32 %v446_v27, 0.0 }
 0x1a5   :  { %471 = vmatpush.msrb.mxu2 %v463_v30 }
 0x1a7   :  { %472 = vmatpush.msrb.mxu2 %v462_v33 }
 0x1a9   :  { %473 = vmatpush.msrb.mxu2 %v461_v36 }
 0x1ab   :  { %474 = vmatpush.msrb.mxu2 %v460_v39 }
 0x1ad   :  { %475 = vmatpush.msrb.mxu2 %v459_v41 }
 0x1af   :  { %476 = vmatpush.msrb.mxu2 %v458_v44 }
 0x1b1   :  { %477 = vmatpush.msrb.mxu2 %v457_v46 }
 0x1b3   :  { %478 = vmatpush.msrb.mxu2 %v456_v49 }
 0x1b5   :  { %479 = vmatpush.msrb.mxu2 %v455_v54 }
 0x1b7   :  { %480 = vmatpush.msrb.mxu2 %v454_v53 }
 0x1b9   :  { %481 = vmatpush.msrb.mxu2 %v453_v57 }
 0x1bb   :  { %482 = vmatpush.msrb.mxu2 %v452_v60 }
 0x1bd   :  { %483 = vmatpush.msrb.mxu2 %v451_v63 }
 0x1bf   :  { %484 = vmatpush.msrb.mxu2 %v450_v2 }
 0x1c1   :  { %485 = vmatpush.msrb.mxu2 %v449_v3 }
 0x1c3   :  { %486 = vmatpush.msrb.mxu2 %v448_v4 }
 0x1c4   :  { %487 = vmatmul.f32.vlgmr.msrb.gmra.mxu2 %v464_v6 }
 0x247   :  { %v488_v9 = vpop.f32.mrf.mxu2 }
 0x248   :  { %v489_v7 = vadd.f32 %v488_v9, %v469_v8 }
 0x24a   :  { %491 = vst [vmem:[%s827_s7] sm:$0xff] %v489_v7 }

</bundles_post_ra>
